<compile_context>
chip_gen: v7x
topology: tpu7x:2x2x1
jax: 0.10.0
libtpu: 0.0.40
codegen_flags: <defaults>
</compile_context>

<pallas_src>
import functools
import math

import jax
import jax.numpy as jnp
from jax.experimental import pallas as pl
from jax.experimental.pallas import tpu as pltpu

_LANE = 512                       # lane-dense slab width (multiple of 128)
_SUBLANE = 8                      # f32 sublane granularity
_TILE_BYTES = 4 * 1024 * 1024     # ~4 MiB per input block


def _mse_partial_kernel(x_ref, t_ref, psum_ref, *, valid_rows, row_tile):
    """Per-block partial sum of squared differences as an aligned (8, lane) tile."""
    x = x_ref[...].astype(jnp.float32)
    t = t_ref[...].astype(jnp.float32)
    d = x - t
    dd = d * d
    if valid_rows is not None:
        # Ragged tail only: rows past the true row count come from Pallas
        # out-of-bounds block padding (unspecified values); `where` selects 0.0
        # regardless, so NaN/Inf garbage cannot leak into the sum.
        row0 = pl.program_id(0) * row_tile
        rid = row0 + jax.lax.broadcasted_iota(jnp.int32, dd.shape, 0)
        dd = jnp.where(rid < valid_rows, dd, 0.0)
    lane = dd.shape[-1]
    # (row_tile, lane) -> (row_tile//8, 8, lane), sum groups of vregs on the VPU.
    # Keeps the output store unmasked and (8,128)-aligned (no XLU reduce, no
    # masked vst.msk).
    psum_ref[...] = jnp.sum(dd.reshape(row_tile // _SUBLANE, _SUBLANE, lane), axis=0)


def content_loss(x, target):
    """Returns (input_passthrough, mse_loss_scalar), matching ContentLoss.forward."""
    assert x.shape == target.shape, "input and target must match shapes"
    n_true = math.prod(x.shape) if x.shape else 1
    itemsize = jnp.dtype(x.dtype).itemsize

    # Flatten and zero-pad to a multiple of lane*8 so the slab is (8,128)-aligned.
    chunk = _LANE * _SUBLANE
    n_pad = pl.cdiv(n_true, chunk) * chunk
    xf = x.reshape(-1)
    tf = target.reshape(-1)
    if n_pad != n_true:
        pad = n_pad - n_true
        xf = jnp.pad(xf, (0, pad))
        tf = jnp.pad(tf, (0, pad))
    rows = n_pad // _LANE          # multiple of 8
    x2 = xf.reshape(rows, _LANE)
    t2 = tf.reshape(rows, _LANE)

    # ~4 MiB per input block (rounded down to a multiple of 8 rows), capped by rows.
    target_rows = max(_SUBLANE,
                      (_TILE_BYTES // (_LANE * itemsize)) // _SUBLANE * _SUBLANE)
    row_tile = min(rows, target_rows)
    num_blocks = pl.cdiv(rows, row_tile)
    ragged = (rows % row_tile) != 0

    kernel = functools.partial(
        _mse_partial_kernel,
        valid_rows=rows if ragged else None,
        row_tile=row_tile,
    )

    out_rows = num_blocks * _SUBLANE
    cost = pl.CostEstimate(
        flops=3 * n_pad,
        bytes_accessed=2 * n_pad * itemsize + out_rows * _LANE * 4,
        transcendentals=0,
    )

    partials = pl.pallas_call(
        kernel,
        out_shape=jax.ShapeDtypeStruct((out_rows, _LANE), jnp.float32),
        grid_spec=pltpu.PrefetchScalarGridSpec(
            num_scalar_prefetch=0,
            grid=(num_blocks,),
            in_specs=[
                pl.BlockSpec((row_tile, _LANE), lambda i: (i, 0)),
                pl.BlockSpec((row_tile, _LANE), lambda i: (i, 0)),
            ],
            out_specs=pl.BlockSpec((_SUBLANE, _LANE), lambda i: (i, 0)),
        ),
        compiler_params=pltpu.CompilerParams(
            dimension_semantics=("parallel",),
            vmem_limit_bytes=48 * 1024 * 1024,
        ),
        cost_estimate=cost,
    )(x2, t2)

    loss = jnp.sum(partials) / jnp.float32(n_true)
    # forward() returns its input unchanged — no kernel write needed.
    return x, loss


if __name__ == "__main__":
    key = jax.random.PRNGKey(0)
    kx, kt = jax.random.split(key)

    # Small NCHW shapes consistent with the module: batch=2, channels=4, 16x16.
    B, C, H, W = 2, 4, 16, 16
    x = jax.random.normal(kx, (B, C, H, W), dtype=jnp.float32)
    target = jax.random.normal(kt, (B, C, H, W), dtype=jnp.float32)  # "detached"

    out, loss = content_loss(x, target)
    out = jax.block_until_ready(out)
    loss = jax.block_until_ready(loss)

    ref_loss = jnp.mean((x - target) ** 2)
    assert jnp.allclose(loss, ref_loss, rtol=1e-5, atol=1e-6), (loss, ref_loss)
    assert jnp.array_equal(out, x), "forward must return input unchanged"

    # Robustness: element count NOT a multiple of 128 (exercises zero-pad path).
    kx2, kt2 = jax.random.split(kt)
    x_odd = jax.random.normal(kx2, (2, 3, 7, 5), dtype=jnp.float32)      # 210 elems
    t_odd = jax.random.normal(kt2, (2, 3, 7, 5), dtype=jnp.float32)
    out_odd, loss_odd = content_loss(x_odd, t_odd)
    loss_odd = jax.block_until_ready(loss_odd)
    ref_odd = jnp.mean((x_odd - t_odd) ** 2)
    assert jnp.allclose(loss_odd, ref_odd, rtol=1e-5, atol=1e-6), (loss_odd, ref_odd)
    assert jnp.array_equal(out_odd, x_odd)

    print("KERNEL_OK")
</pallas_src>

<mosaic_0001>
module attributes {stable_mosaic.version = 11 : i64} {
  func.func @_mse_partial_kernel(%arg0: i32, %arg1: memref<8x512xf32, #tpu.memory_space<vmem>>, %arg2: memref<8x512xf32, #tpu.memory_space<vmem>>, %arg3: memref<8x512xf32, #tpu.memory_space<vmem>>) attributes {dimension_semantics = [#tpu.dimension_semantics<parallel>], iteration_bounds = array<i64: 1>, scalar_prefetch = 0 : i64, scratch_operands = 0 : i64, tpu.core_type = #tpu.core_type<tc>, window_params = [{transform_indices = @transform_0, window_bounds = array<i64: 8, 512>}, {transform_indices = @transform_1, window_bounds = array<i64: 8, 512>}, {transform_indices = @transform_2, window_bounds = array<i64: 8, 512>}]} {
    %c0 = arith.constant 0 : index
    %c0_0 = arith.constant 0 : index
    %0 = vector.load %arg1[%c0, %c0_0] : memref<8x512xf32, #tpu.memory_space<vmem>>, vector<8x512xf32>
    %c0_1 = arith.constant 0 : index
    %c0_2 = arith.constant 0 : index
    %1 = vector.load %arg2[%c0_1, %c0_2] : memref<8x512xf32, #tpu.memory_space<vmem>>, vector<8x512xf32>
    %2 = arith.subf %0, %1 : vector<8x512xf32>
    %3 = arith.mulf %2, %2 : vector<8x512xf32>
    %4 = vector.shape_cast %3 : vector<8x512xf32> to vector<1x8x512xf32>
    %cst = arith.constant dense<0.000000e+00> : vector<8x512xf32>
    %5 = vector.multi_reduction <add>, %4, %cst [0] : vector<1x8x512xf32> to vector<8x512xf32>
    %c0_3 = arith.constant 0 : index
    %c0_4 = arith.constant 0 : index
    %6 = vector.load %arg3[%c0_3, %c0_4] : memref<8x512xf32, #tpu.memory_space<vmem>>, vector<8x512xf32>
    tpu.vector_store %arg3[%c0_3, %c0_4], %5 {strides = array<i32>} : memref<8x512xf32, #tpu.memory_space<vmem>>, vector<8x512xf32>,
    return
  }
  func.func @transform_0(%arg0: i32) -> (i32, i32) {
    %c0_i32 = arith.constant 0 : i32
    %c0_i32_0 = arith.constant 0 : i32
    return %arg0, %c0_i32 : i32, i32
  }
  func.func @transform_1(%arg0: i32) -> (i32, i32) {
    %c0_i32 = arith.constant 0 : i32
    %c0_i32_0 = arith.constant 0 : i32
    return %arg0, %c0_i32 : i32, i32
  }
  func.func @transform_2(%arg0: i32) -> (i32, i32) {
    %c0_i32 = arith.constant 0 : i32
    %c0_i32_0 = arith.constant 0 : i32
    return %arg0, %c0_i32 : i32, i32
  }
}

</mosaic_0001>

<bundles_post_ra>
// kernel: tpu_custom_call.1
= control target key start
LH: loop header
LB: loop body
LE: loop exit
PB: predicated region body
PF: predicated region fallthrough
CT: control target
= control target key end

     0   :  { %7 = vsyncpa [#allocation3], 0  ;;  %s205_s0 = inlined_call_operand.hbm [shape: f32[8,512], index: 0, kind: input, shape index: {}]   ;;  %s206_s1 = inlined_call_operand.hbm [shape: f32[8,512], index: 1, kind: input, shape index: {}]   ;;  %s207_s2 = inlined_call_operand.hbm [shape: f32[8,512], index: 2, kind: output, shape index: {}]  }
   0x1   :  { %8 = vsyncpa [#allocation6], 0 }
   0x2   :  { %9 = vsyncpa [#allocation4], 0  ;;  %s151_s9 = smov [#allocation2]   ;;  %s152_s11 = smov [#allocation5]  }
   0x3   :  { %s16_s10 = sshll.u32 %s151_s9, 4  ;;  %s26_s12 = sshll.u32 %s152_s11, 4  ;;  %s17_s10 = int_to_ptr.vmem [resolvable:$true] %s16_s10  ;;  %s27_s12 = int_to_ptr.vmem [resolvable:$true] %s26_s12 }
   0x4   :  { %s79_s15 = scalar_lea.hbm %s205_s0, 512 }
   0x5   :  { %p80_p0 = scmp.ne.s32.totalorder %s205_s0, %s79_s15  ;;  %p83_p1 = scmp.lt.u32.totalorder %s79_s15, %s205_s0 }
   0x7   :  { %p85_p2 = pnand %p83_p1, %p80_p0 }
   0x9   :  { %88 = shalt.err (!%p85_p2)
}
   0xa   :  { %s89_s20 = scalar_lea.vmem %s17_s10, 512  ;;  %p94_p4 = scmp.lt.s32.totalorder %s17_s10, %s17_s10 }
   0xb   :  { %p90_p3 = scmp.ne.s32.totalorder %s17_s10, %s89_s20  ;;  %p95_p5 = scmp.lt.s32.totalorder %s89_s20, %s89_s20 }
   0xd   :  { %p96_p6 = por %p95_p5, %p94_p4 }
   0xf   :  { %p97_p7 = pnand %p96_p6, %p90_p3 }
  0x11   :  { %100 = shalt.err (!%p97_p7)
}
  0x12   :  { %19 = dma.hbm_to_vmem [thread:$0]  %s205_s0, 512, %s17_s10, [#allocation3]  }
  0x13   :  { %s101_s25 = scalar_lea.hbm %s206_s1, 512 }
  0x14   :  { %p102_p8 = scmp.ne.s32.totalorder %s206_s1, %s101_s25  ;;  %p105_p9 = scmp.lt.u32.totalorder %s101_s25, %s206_s1 }
  0x16   :  { %p107_p10 = pnand %p105_p9, %p102_p8 }
  0x18   :  { %110 = shalt.err (!%p107_p10)
}
  0x19   :  { %s111_s30 = scalar_lea.vmem %s27_s12, 512  ;;  %p116_p12 = scmp.lt.s32.totalorder %s27_s12, %s27_s12 }
  0x1a   :  { %p112_p11 = scmp.ne.s32.totalorder %s27_s12, %s111_s30  ;;  %p117_p13 = scmp.lt.s32.totalorder %s111_s30, %s111_s30 }
  0x1c   :  { %p118_p0 = por %p117_p13, %p116_p12 }
  0x1e   :  { %p119_p1 = pnand %p118_p0, %p112_p11 }
  0x20   :  { %122 = shalt.err (!%p119_p1)
}
  0x21   :  { %29 = dma.hbm_to_vmem [thread:$0]  %s206_s1, 512, %s27_s12, [#allocation6]  }
  0x22   :  { %145 = dma.done.wait [#allocation3], 512  }
  0x23   :  { %146 = vsyncadd [#allocation3], 4294966784 }
  0x24   :  { %147 = dma.done.wait [#allocation6], 512  }
  0x25   :  { %148 = vsyncadd [#allocation6], 4294966784  ;;  %v36_v0 = vld [vmem:[#allocation2] sm:$0xff]  ;;  %v37_v2 = vld [vmem:[#allocation2 + $0x8] sm:$0xff]  ;;  %s153_s4 = smov [#allocation7]  }
  0x26   :  { %v40_v1 = vld [vmem:[#allocation5] sm:$0xff]  ;;  %v41_v4 = vld [vmem:[#allocation5 + $0x8] sm:$0xff]  ;;  %v38_v5 = vld [vmem:[#allocation2 + $0x10] sm:$0xff]  ;;  %s66_s5 = sshll.u32 %s153_s4, 4  ;;  %s67_s5 = int_to_ptr.vmem [resolvable:$true] %s66_s5 }
  0x27   :  { %v44_v3 = vsub.f32 %v36_v0, %v40_v1  ;;  %v42_v6 = vld [vmem:[#allocation5 + $0x10] sm:$0xff]  ;;  %v45_v7 = vsub.f32 %v37_v2, %v41_v4  ;;  %v39_v9 = vld [vmem:[#allocation2 + $0x18] sm:$0xff]  ;;  %s123_s1 = scalar_lea.vmem %s67_s5, 512  ;;  %p128_p3 = scmp.lt.s32.totalorder %s67_s5, %s67_s5 }
  0x28   :  { %v46_v8 = vsub.f32 %v38_v5, %v42_v6  ;;  %v43_v10 = vld [vmem:[#allocation5 + $0x18] sm:$0xff]  ;;  %p124_p2 = scmp.ne.s32.totalorder %s67_s5, %s123_s1  ;;  %p129_p4 = scmp.lt.s32.totalorder %s123_s1, %s123_s1 }
  0x29   :  { %v48_v11 = vmul.f32 %v44_v3, %v44_v3  ;;  %v47_v12 = vsub.f32 %v39_v9, %v43_v10  ;;  %v49_v13 = vmul.f32 %v45_v7, %v45_v7 }
  0x2a   :  { %v50_v14 = vmul.f32 %v46_v8, %v46_v8  ;;  %p130_p5 = por %p129_p4, %p128_p3 }
  0x2b   :  { %56 = vst [vmem:[#allocation7] sm:$0xff] %v48_v11  ;;  %v51_v15 = vmul.f32 %v47_v12, %v47_v12  ;;  %57 = vst [vmem:[#allocation7 + $0x8] sm:$0xff] %v49_v13 }
  0x2c   :  { %58 = vst [vmem:[#allocation7 + $0x10] sm:$0xff] %v50_v14  ;;  %p131_p6 = pnand %p130_p5, %p124_p2 }
  0x2d   :  { %59 = vst [vmem:[#allocation7 + $0x18] sm:$0xff] %v51_v15 }
  0x2e   :  { %134 = shalt.err (!%p131_p6)
}
  0x2f   :  { %s135_s8 = scalar_lea.hbm %s207_s2, 512 }
  0x30   :  { %p136_p7 = scmp.ne.s32.totalorder %s207_s2, %s135_s8  ;;  %p139_p8 = scmp.lt.u32.totalorder %s135_s8, %s207_s2 }
  0x32   :  { %p141_p9 = pnand %p139_p8, %p136_p7 }
  0x34   :  { %144 = shalt.err (!%p141_p9)
}
  0x35   :  { %69 = dma.vmem_to_hbm [thread:$0]  %s67_s5, 512, %s207_s2, [#allocation4]  }
  0x36   :  { %149 = dma.done.wait [#allocation4], 512  }
  0x37   :  { %150 = vsyncadd [#allocation4], 4294966784 }
  0x38   :  { %73 = vsyncpa [#allocation3], 1 }
  0x39   :  { %74 = vsyncpa [#allocation6], 1 }
  0x3a   :  { %75 = vsyncpa [#allocation4], 1 }

</bundles_post_ra>
